<compile_context>
chip_gen: v7x
topology: tpu7x:2x2x1
jax: 0.10.0
libtpu: 0.0.40
codegen_flags: <defaults>
</compile_context>

<pallas_src>
import jax
import jax.numpy as jnp
from jax.experimental import pallas as pl
from jax.experimental.pallas import tpu as pltpu

_LANES = 128


def _round_up(v: int, m: int) -> int:
    return ((v + m - 1) // m) * m


def _make_norm_kernel(d_model: int, eps: float, packed: bool):
    inv_n = 1.0 / float(d_model)
    # torch.std default is unbiased (divide by N-1).
    # TODO(synk): d_model == 1 diverges from torch (torch.std yields NaN; we
    # clamp the divisor and emit `bias` for that degenerate case).
    inv_nm1 = 1.0 / float(d_model - 1) if d_model > 1 else 1.0
    eps = float(eps)

    def _finish(x, s1, s2, alpha, bias, o_ref):
        mean = s1 * inv_n
        # One-pass variance: (sum(x^2) - N*mean^2) / (N-1); clamp guards the
        # tiny negative values cancellation can produce.
        var = jnp.maximum((s2 - s1 * mean) * inv_nm1, 0.0)
        denom = jnp.sqrt(var) + eps
        # EUP approximate reciprocal + one Newton-Raphson step: ~f32 accuracy
        # without occupying the VALU divide path.
        inv = pl.reciprocal(denom, approx=True)
        inv = inv * (2.0 - denom * inv)
        # (x - mean) recomputed inline: no full-tile centered temporary.
        o_ref[...] = ((x - mean) * inv * alpha + bias).astype(o_ref.dtype)

    if packed:
        def kernel(x_ref, seg_ref, alpha_ref, bias_ref, o_ref):
            # x_ref: (tile, 128) with g = 128/d_model original rows per
            # lane-row; seg_ref: (128, 128) segment-membership matrix.
            x = x_ref[...].astype(jnp.float32)
            seg = seg_ref[...]
            # Segmented (per original row) sums, broadcast across each
            # segment, via a tiny MXU matmul -- the MXU is otherwise idle and
            # this keeps all vector work lane-dense with unmasked stores.
            s1 = jnp.dot(x, seg, preferred_element_type=jnp.float32)
            s2 = jnp.dot(x * x, seg, preferred_element_type=jnp.float32)
            _finish(x, s1, s2, alpha_ref[...], bias_ref[...], o_ref)
    else:
        def kernel(x_ref, alpha_ref, bias_ref, o_ref):
            # x_ref: (tile, d_model); alpha/bias: (1, d_model), already f32.
            x = x_ref[...].astype(jnp.float32)
            s1 = jnp.sum(x, axis=-1, keepdims=True)
            s2 = jnp.sum(x * x, axis=-1, keepdims=True)
            _finish(x, s1, s2, alpha_ref[...], bias_ref[...], o_ref)

    return kernel


def _pick_row_tile(rows: int, width: int, itemsize: int) -> int:
    if rows <= 8:
        return rows  # single full-extent block (full-dim block is always legal)
    # Size off the f32 working set (x is upcast to f32 in-kernel), not the raw
    # input itemsize; ~2 MiB blocks keep the f32 intermediates plus the
    # double-buffered in/out pipeline buffers inside every generation's VMEM.
    work_itemsize = max(4, itemsize)
    target_block_bytes = 2 * 1024 * 1024
    cap = max(8, (target_block_bytes // max(1, width * work_itemsize)) // 8 * 8)
    # Keep enough grid steps to hide the pipeline ramp: >= 8 steps (>= 4 per
    # v7x TensorCore) when rows still allow >= 256-row tiles, else >= 4 steps
    # with >= 128-row tiles. Below that, a couple of big steps is the best fit.
    if rows >= 8 * 256:
        cap = min(cap, max(256, _round_up(pl.cdiv(rows, 8), 8)))
    elif rows >= 4 * 128:
        cap = min(cap, max(128, _round_up(pl.cdiv(rows, 4), 8)))
    # Never exceed the array extent; the ragged tail is handled by Pallas'
    # partial-block masking (no wrapper-side jnp.pad copy of x).
    return max(8, min(cap, 8 * (rows // 8)))


def _vmem_limit_bytes() -> int:
    cap = None
    try:
        cap = getattr(pltpu.get_tpu_info(), "vmem_capacity_bytes", None)
    except Exception:
        cap = None
    if not cap:
        cap = 64 * 1024 * 1024  # conservative: v7x per-TensorCore budget
    if cap >= 128 * 1024 * 1024:
        return 64 * 1024 * 1024            # v5e / v6e: ample physical VMEM
    return min(48 * 1024 * 1024, cap * 3 // 4)  # v7x: leave headroom


def norm_forward(x, alpha, bias, eps=1e-6, row_tile=None):
    """Apply Norm over the last axis of x. alpha/bias have shape (d_model,)."""
    orig_shape = x.shape
    d_model = int(orig_shape[-1])
    rows = 1
    for s in orig_shape[:-1]:
        rows *= int(s)

    x2 = x.reshape(rows, d_model)
    # Hoist parameter casts out of the kernel (done once, not per grid step).
    alpha_f32 = alpha.reshape(-1).astype(jnp.float32)
    bias_f32 = bias.reshape(-1).astype(jnp.float32)

    compiler_params = pltpu.CompilerParams(
        dimension_semantics=("parallel",),
        vmem_limit_bytes=_vmem_limit_bytes(),
    )

    # Lane-dense repack when d_model divides 128: fold g rows into the lane
    # axis (free in HBM: row-major layout unchanged) so stores are unmasked.
    g = _LANES // d_model if 1 < d_model < _LANES else 1
    packed = (1 < d_model < _LANES and _LANES % d_model == 0
              and g > 1 and rows > 0 and rows % g == 0)
    # TODO(synk): d_model values that neither reach nor divide 128 (and row
    # counts not divisible by g) fall back to the masked-store path below.

    if packed:
        p_rows = rows // g
        xp = x2.reshape(p_rows, _LANES)
        lane_seg = jnp.arange(_LANES) // d_model
        seg = (lane_seg[:, None] == lane_seg[None, :]).astype(jnp.float32)
        alpha_p = jnp.tile(alpha_f32, g).reshape(1, _LANES)
        bias_p = jnp.tile(bias_f32, g).reshape(1, _LANES)
        tile = row_tile if row_tile is not None else _pick_row_tile(
            p_rows, _LANES, x2.dtype.itemsize)
        kernel = _make_norm_kernel(d_model, eps, packed=True)
        # TODO(synk): if a profile shows exposed input DMA on v7x, add
        # pipeline_mode=pl.Buffered(3) to the x BlockSpec.
        out = pl.pallas_call(
            kernel,
            out_shape=jax.ShapeDtypeStruct((p_rows, _LANES), x.dtype),
            grid_spec=pltpu.PrefetchScalarGridSpec(
                num_scalar_prefetch=0,
                grid=(pl.cdiv(p_rows, tile),),
                in_specs=[
                    pl.BlockSpec((tile, _LANES), lambda i: (i, 0)),
                    pl.BlockSpec((_LANES, _LANES), lambda i: (0, 0)),
                    pl.BlockSpec((1, _LANES), lambda i: (0, 0)),
                    pl.BlockSpec((1, _LANES), lambda i: (0, 0)),
                ],
                out_specs=pl.BlockSpec((tile, _LANES), lambda i: (i, 0)),
            ),
            compiler_params=compiler_params,
        )(xp, seg, alpha_p, bias_p)
        return out.reshape(orig_shape)

    alpha2 = alpha_f32.reshape(1, d_model)
    bias2 = bias_f32.reshape(1, d_model)
    tile = row_tile if row_tile is not None else _pick_row_tile(
        rows, d_model, x2.dtype.itemsize)
    kernel = _make_norm_kernel(d_model, eps, packed=False)
    out = pl.pallas_call(
        kernel,
        out_shape=jax.ShapeDtypeStruct((rows, d_model), x.dtype),
        grid_spec=pltpu.PrefetchScalarGridSpec(
            num_scalar_prefetch=0,
            grid=(pl.cdiv(rows, tile),),
            in_specs=[
                pl.BlockSpec((tile, d_model), lambda i: (i, 0)),
                pl.BlockSpec((1, d_model), lambda i: (0, 0)),
                pl.BlockSpec((1, d_model), lambda i: (0, 0)),
            ],
            out_specs=pl.BlockSpec((tile, d_model), lambda i: (i, 0)),
        ),
        compiler_params=compiler_params,
    )(x2, alpha2, bias2)
    return out.reshape(orig_shape)


def _ref_norm(x, alpha, bias, eps):
    mean = jnp.mean(x, axis=-1, keepdims=True)
    std = jnp.std(x, axis=-1, keepdims=True, ddof=1)  # unbiased, like torch.std
    return alpha * (x - mean) / (std + eps) + bias


if __name__ == "__main__":
    key = jax.random.PRNGKey(0)

    # Deterministic parameter init matching nn.Parameter(torch.ones/zeros)
    d_model = 32
    alpha = jnp.ones((d_model,), dtype=jnp.float32)
    bias = jnp.zeros((d_model,), dtype=jnp.float32)
    eps = 1e-6

    # Case 1: rows divisible by the lane-pack factor -> lane-dense packed path
    x1 = jax.random.normal(key, (2, 8, d_model), dtype=jnp.float32)
    out1 = jax.block_until_ready(norm_forward(x1, alpha, bias, eps=eps))
    ref1 = _ref_norm(x1, alpha, bias, eps)
    assert jnp.allclose(out1, ref1, atol=1e-5, rtol=1e-5), "mismatch (case 1)"

    # Case 2: ragged row count -> plain path with a masked partial last block
    x2 = jax.random.normal(jax.random.PRNGKey(0), (3, 5, d_model),
                           dtype=jnp.float32)
    out2 = jax.block_until_ready(norm_forward(x2, alpha, bias, eps=eps))
    ref2 = _ref_norm(x2, alpha, bias, eps)
    assert jnp.allclose(out2, ref2, atol=1e-5, rtol=1e-5), "mismatch (case 2)"

    print("KERNEL_OK")
</pallas_src>

<mosaic_0001>
module attributes {stable_mosaic.version = 11 : i64} {
  func.func @kernel(%arg0: i32, %arg1: memref<4x128xf32, #tpu.memory_space<vmem>>, %arg2: memref<128x128xf32, #tpu.memory_space<vmem>>, %arg3: memref<1x128xf32, #tpu.memory_space<vmem>>, %arg4: memref<1x128xf32, #tpu.memory_space<vmem>>, %arg5: memref<4x128xf32, #tpu.memory_space<vmem>>) attributes {dimension_semantics = [#tpu.dimension_semantics<parallel>], iteration_bounds = array<i64: 1>, scalar_prefetch = 0 : i64, scratch_operands = 0 : i64, tpu.core_type = #tpu.core_type<tc>, window_params = [{transform_indices = @transform_0, window_bounds = array<i64: 4, 128>}, {pipeline_mode = #tpu.pipeline_mode<synchronous>, transform_indices = @transform_1, window_bounds = array<i64: 128, 128>}, {pipeline_mode = #tpu.pipeline_mode<synchronous>, transform_indices = @transform_2, window_bounds = array<i64: 1, 128>}, {pipeline_mode = #tpu.pipeline_mode<synchronous>, transform_indices = @transform_3, window_bounds = array<i64: 1, 128>}, {transform_indices = @transform_4, window_bounds = array<i64: 4, 128>}]} {
    %c0 = arith.constant 0 : index
    %c0_0 = arith.constant 0 : index
    %0 = vector.load %arg1[%c0, %c0_0] : memref<4x128xf32, #tpu.memory_space<vmem>>, vector<4x128xf32>
    %c0_1 = arith.constant 0 : index
    %c0_2 = arith.constant 0 : index
    %1 = vector.load %arg2[%c0_1, %c0_2] : memref<128x128xf32, #tpu.memory_space<vmem>>, vector<128x128xf32>
    %cst = arith.constant dense<0.000000e+00> : vector<4x128xf32>
    %2 = tpu.matmul %0, %1, %cst {dimension_numbers = #tpu.dot_dimension_numbers<[1], [0], [0], [1], [0, 0, 1, 1], [], []>} : vector<4x128xf32>, vector<128x128xf32>, vector<4x128xf32> -> vector<4x128xf32>
    %3 = arith.mulf %0, %0 : vector<4x128xf32>
    %cst_3 = arith.constant dense<0.000000e+00> : vector<4x128xf32>
    %4 = tpu.matmul %3, %1, %cst_3 {dimension_numbers = #tpu.dot_dimension_numbers<[1], [0], [0], [1], [0, 0, 1, 1], [], []>} : vector<4x128xf32>, vector<128x128xf32>, vector<4x128xf32> -> vector<4x128xf32>
    %c0_4 = arith.constant 0 : index
    %c0_5 = arith.constant 0 : index
    %5 = vector.load %arg3[%c0_4, %c0_5] : memref<1x128xf32, #tpu.memory_space<vmem>>, vector<1x128xf32>
    %c0_6 = arith.constant 0 : index
    %c0_7 = arith.constant 0 : index
    %6 = vector.load %arg4[%c0_6, %c0_7] : memref<1x128xf32, #tpu.memory_space<vmem>>, vector<1x128xf32>
    %cst_8 = arith.constant 3.125000e-02 : f32
    %7 = vector.broadcast %cst_8 : f32 to vector<4x128xf32>
    %8 = arith.mulf %2, %7 : vector<4x128xf32>
    %9 = arith.mulf %2, %8 : vector<4x128xf32>
    %10 = arith.subf %4, %9 : vector<4x128xf32>
    %cst_9 = arith.constant 0.0322580636 : f32
    %11 = vector.broadcast %cst_9 : f32 to vector<4x128xf32>
    %12 = arith.mulf %10, %11 : vector<4x128xf32>
    %cst_10 = arith.constant 0.000000e+00 : f32
    %13 = vector.broadcast %cst_10 : f32 to vector<4x128xf32>
    %14 = arith.maximumf %12, %13 : vector<4x128xf32>
    %15 = math.sqrt %14 : vector<4x128xf32>
    %cst_11 = arith.constant 9.99999997E-7 : f32
    %16 = vector.broadcast %cst_11 : f32 to vector<4x128xf32>
    %17 = arith.addf %15, %16 : vector<4x128xf32>
    %18 = tpu.reciprocal %17 {approx = true} : vector<4x128xf32> -> vector<4x128xf32>
    %19 = arith.mulf %17, %18 : vector<4x128xf32>
    %cst_12 = arith.constant 2.000000e+00 : f32
    %20 = vector.broadcast %cst_12 : f32 to vector<4x128xf32>
    %21 = arith.subf %20, %19 : vector<4x128xf32>
    %22 = arith.mulf %18, %21 : vector<4x128xf32>
    %23 = arith.subf %0, %8 : vector<4x128xf32>
    %24 = arith.mulf %23, %22 : vector<4x128xf32>
    %25 = vector.broadcast %5 : vector<1x128xf32> to vector<4x128xf32>
    %26 = arith.mulf %24, %25 : vector<4x128xf32>
    %27 = vector.broadcast %6 : vector<1x128xf32> to vector<4x128xf32>
    %28 = arith.addf %26, %27 : vector<4x128xf32>
    %c0_13 = arith.constant 0 : index
    %c0_14 = arith.constant 0 : index
    %29 = vector.load %arg5[%c0_13, %c0_14] : memref<4x128xf32, #tpu.memory_space<vmem>>, vector<4x128xf32>
    tpu.vector_store %arg5[%c0_13, %c0_14], %28 {strides = array<i32>} : memref<4x128xf32, #tpu.memory_space<vmem>>, vector<4x128xf32>,
    return
  }
  func.func @transform_0(%arg0: i32) -> (i32, i32) {
    %c0_i32 = arith.constant 0 : i32
    %c0_i32_0 = arith.constant 0 : i32
    return %arg0, %c0_i32 : i32, i32
  }
  func.func @transform_1(%arg0: i32) -> (i32, i32) {
    %c0_i32 = arith.constant 0 : i32
    %c0_i32_0 = arith.constant 0 : i32
    %c0_i32_1 = arith.constant 0 : i32
    return %c0_i32, %c0_i32_0 : i32, i32
  }
  func.func @transform_2(%arg0: i32) -> (i32, i32) {
    %c0_i32 = arith.constant 0 : i32
    %c0_i32_0 = arith.constant 0 : i32
    %c0_i32_1 = arith.constant 0 : i32
    return %c0_i32, %c0_i32_0 : i32, i32
  }
  func.func @transform_3(%arg0: i32) -> (i32, i32) {
    %c0_i32 = arith.constant 0 : i32
    %c0_i32_0 = arith.constant 0 : i32
    %c0_i32_1 = arith.constant 0 : i32
    return %c0_i32, %c0_i32_0 : i32, i32
  }
  func.func @transform_4(%arg0: i32) -> (i32, i32) {
    %c0_i32 = arith.constant 0 : i32
    %c0_i32_0 = arith.constant 0 : i32
    return %arg0, %c0_i32 : i32, i32
  }
}

</mosaic_0001>

<bundles_post_ra>
// kernel: tpu_custom_call.1
= control target key start
LH: loop header
LB: loop body
LE: loop exit
PB: predicated region body
PF: predicated region fallthrough
CT: control target
= control target key end

     0   :  { %9 = vsyncpa [#allocation3], 0  ;;  %s574_s0 = inlined_call_operand.hbm [shape: f32[4,128], index: 0, kind: input, shape index: {}]   ;;  %s575_s1 = inlined_call_operand.hbm [shape: f32[128,128], index: 1, kind: input, shape index: {}]   ;;  %s576_s2 = inlined_call_operand.vmem [shape: f32[1,128], index: 2, kind: input, shape index: {}]   ;;  %s577_s3 = inlined_call_operand.vmem [shape: f32[1,128], index: 3, kind: input, shape index: {}]   ;;  %s578_s4 = inlined_call_operand.hbm [shape: f32[4,128], index: 4, kind: output, shape index: {}]  }
   0x1   :  { %10 = vsyncpa [#allocation6], 0 }
   0x2   :  { %11 = vsyncpa [#allocation4], 0  ;;  %s492_s15 = smov [#allocation2]   ;;  %s493_s17 = smov [#allocation5]  }
   0x3   :  { %s18_s16 = sshll.u32 %s492_s15, 4  ;;  %s27_s18 = sshll.u32 %s493_s17, 4  ;;  %s19_s16 = int_to_ptr.vmem [resolvable:$true] %s18_s16  ;;  %s525_s18 = int_to_ptr.vmem [resolvable:$true] %s27_s18 }
   0x4   :  { %s420_s21 = scalar_lea.hbm %s574_s0, 64 }
   0x5   :  { %p421_p0 = scmp.ne.s32.totalorder %s574_s0, %s420_s21  ;;  %p424_p1 = scmp.lt.u32.totalorder %s420_s21, %s574_s0 }
   0x7   :  { %p426_p2 = pnand %p424_p1, %p421_p0 }
   0x9   :  { %429 = shalt.err (!%p426_p2)
}
   0xa   :  { %s430_s26 = scalar_lea.vmem %s19_s16, 64  ;;  %p435_p4 = scmp.lt.s32.totalorder %s19_s16, %s19_s16 }
   0xb   :  { %p431_p3 = scmp.ne.s32.totalorder %s19_s16, %s430_s26  ;;  %p436_p5 = scmp.lt.s32.totalorder %s430_s26, %s430_s26 }
   0xd   :  { %p437_p6 = por %p436_p5, %p435_p4 }
   0xf   :  { %p438_p7 = pnand %p437_p6, %p431_p3 }
  0x11   :  { %441 = shalt.err (!%p438_p7)
}
  0x12   :  { %21 = dma.hbm_to_vmem [thread:$0]  %s574_s0, 64, %s19_s16, [#allocation3]  }
  0x13   :  { %s442_s5 = scalar_lea.hbm %s575_s1, 2048 }
  0x14   :  { %p443_p8 = scmp.ne.s32.totalorder %s575_s1, %s442_s5  ;;  %p446_p9 = scmp.lt.u32.totalorder %s442_s5, %s575_s1 }
  0x16   :  { %p448_p10 = pnand %p446_p9, %p443_p8 }
  0x18   :  { %451 = shalt.err (!%p448_p10)
}
  0x19   :  { %s452_s10 = scalar_lea.vmem %s525_s18, 2048  ;;  %p457_p12 = scmp.lt.s32.totalorder %s525_s18, %s525_s18 }
  0x1a   :  { %p453_p11 = scmp.ne.s32.totalorder %s525_s18, %s452_s10  ;;  %p458_p13 = scmp.lt.s32.totalorder %s452_s10, %s452_s10 }
  0x1c   :  { %p459_p0 = por %p458_p13, %p457_p12 }
  0x1e   :  { %p460_p1 = pnand %p459_p0, %p453_p11 }
  0x20   :  { %463 = shalt.err (!%p460_p1)
}
  0x21   :  { %s494_s0 = smov 128   ;;  %s495_s11 = smov 8  }
  0x22   :  { %33 = dma.hbm_to_vmem [thread:$0]  %s575_s1, 2048, %s525_s18, [#allocation6], %s494_s0, %s494_s0, %s495_s11  }
  0x23   :  { %486 = dma.done.wait [#allocation3], 64  }
  0x24   :  { %487 = vsyncadd [#allocation3], 4294967232 }
  0x25   :  { %488 = dma.done.wait [#allocation6], 2048  }
  0x26   :  { %489 = vsyncadd [#allocation6], 4294965248  ;;  %v496_v0 = vmov 0.0|0.0   ;;  %vm497_vm0 = vmmov 0   ;;  %v498_v1 = vmov 0.0   ;;  %v45_v2 = vld [vmem:[#allocation5] sm:$0xff] }
  0x27   :  { %360 = vmatprep.subr.bf16.mxu0 %v496_v0  ;;  %384 = vmatprep.subr.bf16.mxu1 %v496_v0  ;;  %v46_v3 = vld [vmem:[#allocation5 + $0x8] sm:$0xff]  ;;  %v47_v4 = vld [vmem:[#allocation5 + $0x10] sm:$0xff]  ;;  %v48_v6 = vld [vmem:[#allocation5 + $0x18] sm:$0xff]  ;;  %s499_s17 = smov [#allocation7]  }
  0x28   :  { %322 = vmatprep.mubr.msk.f32.mxu0 %vm497_vm0, %v498_v1  ;;  %357 = vmatprep.mubr.msk.f32.mxu1 %vm497_vm0, %v498_v1  ;;  %v361_v5 = vpack.c.bf16 %v46_v3, %v45_v2  ;;  %v364_v7 = vpack.c.bf16 %v48_v6, %v47_v4  ;;  %v49_v8 = vld [vmem:[#allocation5 + $0x20] sm:$0xff]  ;;  %v50_v9 = vld [vmem:[#allocation5 + $0x28] sm:$0xff]  ;;  %v51_v11 = vld [vmem:[#allocation5 + $0x30] sm:$0xff]  ;;  %s244_s18 = sshll.u32 %s499_s17, 4  ;;  %s245_s18 = int_to_ptr.vmem [resolvable:$true] %s244_s18 }
  0x29   :  { %v367_v10 = vpack.c.bf16 %v50_v9, %v49_v8  ;;  %v52_v12 = vld [vmem:[#allocation5 + $0x38] sm:$0xff]  ;;  %v53_v14 = vld [vmem:[#allocation5 + $0x40] sm:$0xff]  ;;  %v54_v15 = vld [vmem:[#allocation5 + $0x48] sm:$0xff]  ;;  %s464_s19 = scalar_lea.vmem %s245_s18, 64  ;;  %p469_p3 = scmp.lt.s32.totalorder %s245_s18, %s245_s18 }
  0x2a   :  { %362 = vmatpush3.bf16.msra.mxu0 %v361_v5  ;;  %386 = vmatpush3.bf16.msra.mxu1 %v361_v5  ;;  %v370_v13 = vpack.c.bf16 %v52_v12, %v51_v11  ;;  %v373_v16 = vpack.c.bf16 %v54_v15, %v53_v14  ;;  %v55_v17 = vld [vmem:[#allocation5 + $0x50] sm:$0xff]  ;;  %v56_v18 = vld [vmem:[#allocation5 + $0x58] sm:$0xff]  ;;  %v57_v20 = vld [vmem:[#allocation5 + $0x60] sm:$0xff]  ;;  %p465_p2 = scmp.ne.s32.totalorder %s245_s18, %s464_s19  ;;  %p470_p4 = scmp.lt.s32.totalorder %s464_s19, %s464_s19 }
  0x2b   :  { %363 = vmatprep.subr.bf16.mxu0 %v496_v0  ;;  %387 = vmatprep.subr.bf16.mxu1 %v496_v0  ;;  %v376_v19 = vpack.c.bf16 %v56_v18, %v55_v17  ;;  %v58_v21 = vld [vmem:[#allocation5 + $0x68] sm:$0xff]  ;;  %v59_v23 = vld [vmem:[#allocation5 + $0x70] sm:$0xff]  ;;  %v60_v24 = vld [vmem:[#allocation5 + $0x78] sm:$0xff] }
  0x2c   :  { %v379_v22 = vpack.c.bf16 %v58_v21, %v57_v20  ;;  %v382_v25 = vpack.c.bf16 %v60_v24, %v59_v23  ;;  %v44_v26 = vld [vmem:[#allocation2] sm:$0xf]  ;;  %p471_p5 = por %p470_p4, %p469_p3 }
  0x2d   :  { %v131_v27 = vmul.f32 %v44_v26, %v44_v26  ;;  %v254_v48 = vld [vmem:[%s576_s2] ss:$0 sm:$0xff] }
  0x2e   :  { %365 = vmatpush3.bf16.msra.mxu0 %v364_v7  ;;  %389 = vmatpush3.bf16.msra.mxu1 %v364_v7  ;;  %v255_v50 = vld [vmem:[%s577_s3] ss:$0 sm:$0xff]  ;;  %p472_p6 = pnand %p471_p5, %p465_p2 }
  0x2f   :  { %366 = vmatprep.subr.bf16.mxu0 %v496_v0  ;;  %390 = vmatprep.subr.bf16.mxu1 %v496_v0 }
  0x32   :  { %368 = vmatpush3.bf16.msra.mxu0 %v367_v10  ;;  %392 = vmatpush3.bf16.msra.mxu1 %v367_v10 }
  0x33   :  { %369 = vmatprep.subr.bf16.mxu0 %v496_v0  ;;  %393 = vmatprep.subr.bf16.mxu1 %v496_v0 }
  0x36   :  { %371 = vmatpush3.bf16.msra.mxu0 %v370_v13  ;;  %395 = vmatpush3.bf16.msra.mxu1 %v370_v13 }
  0x37   :  { %372 = vmatprep.subr.bf16.mxu0 %v496_v0  ;;  %396 = vmatprep.subr.bf16.mxu1 %v496_v0 }
  0x3a   :  { %374 = vmatpush3.bf16.msra.mxu0 %v373_v16  ;;  %398 = vmatpush3.bf16.msra.mxu1 %v373_v16 }
  0x3b   :  { %375 = vmatprep.subr.bf16.mxu0 %v496_v0  ;;  %399 = vmatprep.subr.bf16.mxu1 %v496_v0 }
  0x3e   :  { %377 = vmatpush3.bf16.msra.mxu0 %v376_v19  ;;  %401 = vmatpush3.bf16.msra.mxu1 %v376_v19 }
  0x3f   :  { %378 = vmatprep.subr.bf16.mxu0 %v496_v0  ;;  %402 = vmatprep.subr.bf16.mxu1 %v496_v0 }
  0x42   :  { %380 = vmatpush3.bf16.msra.mxu0 %v379_v22  ;;  %404 = vmatpush3.bf16.msra.mxu1 %v379_v22 }
  0x43   :  { %381 = vmatprep.subr.bf16.mxu0 %v496_v0  ;;  %405 = vmatprep.subr.bf16.mxu1 %v496_v0 }
  0x46   :  { %383 = vmatpush3.bf16.msra.mxu0 %v382_v25  ;;  %407 = vmatpush3.bf16.msra.mxu1 %v382_v25 }
  0x49   :  { %323 = vmatmul.mubr.f32.vlgmr.msra.gmra.mrb[0].mxu0 %v44_v26  ;;  %358 = vmatmul.mubr.f32.vlgmr.msra.gmra.mrb[0].mxu1 %v131_v27 }
 0x11c   :  { %v127_v28 = vpop.f32.mrb[0].mxu0  ;;  %v198_v29 = vpop.f32.mrb[0].mxu1 }
 0x11d   :  { %v204_v30 = vmul.f32 0.03125, %v127_v28  ;;  %v324_v31 = vpop.f32.mrb[1].mxu0  ;;  %v359_v32 = vpop.f32.mrb[1].mxu1 }
 0x11f   :  { %v205_v33 = vmul.f32 %v204_v30, %v127_v28  ;;  %v221_v46 = vsub.f32 %v44_v26, %v204_v30 }
 0x121   :  { %v206_v34 = vsub.f32 %v198_v29, %v205_v33 }
 0x123   :  { %v207_v35 = vmul.f32 0.032258064, %v206_v34 }
 0x125   :  { %v208_v36 = vmax.f32 %v207_v35, 0.0 }
 0x127   :  { %416 = vrsqrt.f32 %v208_v36  ;;  %vm211_vm1 = vcmp.eq.f32.partialorder %v208_v36, inf  ;;  %v214_v39 = vand.u32 2147483648, %v208_v36  ;;  %vm213_vm2 = vcmp.eq.f32.partialorder %v208_v36, 0.0 }
 0x131   :  { %v417_v37 = vpop.eup %416 }
 0x132   :  { %v210_v38 = vmul.f32 %v417_v37, %v208_v36 }
 0x134   :  { %v212_v40 = vsel %vm211_vm1, %v208_v36, %v210_v38 }
 0x135   :  { %v215_v41 = vsel %vm213_vm2, %v214_v39, %v212_v40 }
 0x136   :  { %v216_v42 = vadd.f32 1e-06, %v215_v41 }
 0x138   :  { %418 = vrcp.f32 %v216_v42 }
 0x142   :  { %v419_v43 = vpop.eup %418 }
 0x143   :  { %v218_v44 = vmul.f32 %v419_v43, %v216_v42 }
 0x145   :  { %v219_v45 = vsub.f32 2.0, %v218_v44 }
 0x147   :  { %v220_v47 = vmul.f32 %v419_v43, %v219_v45 }
 0x149   :  { %v222_v49 = vmul.f32 %v221_v46, %v220_v47 }
 0x14b   :  { %v229_v51 = vmul.f32 %v254_v48, %v222_v49 }
 0x14d   :  { %v236_v52 = vadd.f32 %v255_v50, %v229_v51 }
 0x14f   :  { %237 = vst [vmem:[#allocation7] sm:$0xf] %v236_v52 }
 0x150   :  { %475 = shalt.err (!%p472_p6)
}
 0x151   :  { %s476_s21 = scalar_lea.hbm %s578_s4, 64 }
 0x152   :  { %p477_p7 = scmp.ne.s32.totalorder %s578_s4, %s476_s21  ;;  %p480_p8 = scmp.lt.u32.totalorder %s476_s21, %s578_s4 }
 0x154   :  { %p482_p9 = pnand %p480_p8, %p477_p7 }
 0x156   :  { %485 = shalt.err (!%p482_p9)
}
 0x157   :  { %247 = dma.vmem_to_hbm [thread:$0]  %s245_s18, 64, %s578_s4, [#allocation4]  }
 0x158   :  { %490 = dma.done.wait [#allocation4], 64  }
 0x159   :  { %491 = vsyncadd [#allocation4], 4294967232 }
 0x15a   :  { %251 = vsyncpa [#allocation3], 1 }
 0x15b   :  { %252 = vsyncpa [#allocation6], 1 }
 0x15c   :  { %253 = vsyncpa [#allocation4], 1 }

</bundles_post_ra>
